<compile_context>
chip_gen: v6e
topology: v6e:2x2x1
jax: 0.10.0
libtpu: 0.0.40
codegen_flags: <defaults>
</compile_context>

<pallas_src>
import functools

import jax
import jax.numpy as jnp
from jax.experimental import pallas as pl
from jax.experimental.pallas import tpu as pltpu


def _conv_masks(H, W):
    """(9, H*W) f32 validity masks for the 3x3 taps with zero padding.

    Tap order t = (dy+1)*3 + (dx+1), dy outer / dx inner — must match both the
    kernel's tap loop and the weight reshape in the wrapper.
    """
    ys = jnp.repeat(jnp.arange(H), W)       # p // W
    xs = jnp.tile(jnp.arange(W), H)         # p %  W
    rows = []
    for dy in (-1, 0, 1):
        for dx in (-1, 0, 1):
            ok = ((ys + dy >= 0) & (ys + dy < H) &
                  (xs + dx >= 0) & (xs + dx < W))
            rows.append(ok.astype(jnp.float32))
    return jnp.stack(rows, axis=0)


def _resnet_block_kernel(x_ref, w0_ref, w1_ref, masks_ref, o_ref,
                         p0_ref, p1_ref, *, H, W, cin, cmid, cout, res_scale):
    """One batch element per grid step.

    x_ref    : (1, Cin, H*W)          input, channels on sublanes, pixels on lanes
    w0_ref   : (Cmid, 9*Cin + 1)      conv0 weights, bias folded in as last column
    w1_ref   : (Cout, 9*Cmid + 1)     conv1 weights, bias folded in as last column
    masks_ref: (9, H*W)               zero-padding validity masks per tap
    o_ref    : (1, Cout, H*W)         output (lane-dense store)
    p0_ref   : (9*Cin + 1, H*W)       VMEM im2col patches for conv0
    p1_ref   : (9*Cmid + 1, H*W)      VMEM im2col patches for conv1
    """
    HW = H * W
    x2d = x_ref[0]                                     # (Cin, HW)

    def build_patches(src, nc, patches_ref):
        # im2col: 9 shifted (pltpu.roll) + boundary-masked copies of `src`
        # stacked along sublanes, plus a constant ones row so the conv bias
        # rides inside the single fused matmul.
        t = 0
        for dy in (-1, 0, 1):
            for dx in (-1, 0, 1):
                s = dy * W + dx                        # flat-index shift of tap
                if s == 0:
                    tap = src
                else:
                    tap = pltpu.roll(src, shift=(-s) % HW, axis=1)
                if not (dy == 0 and dx == 0):
                    tap = tap * masks_ref[t:t + 1, :]  # zero out wrapped pixels
                patches_ref[t * nc:(t + 1) * nc, :] = tap
                t += 1
        patches_ref[9 * nc:9 * nc + 1, :] = jnp.ones((1, HW), jnp.float32)

    # ---- conv0 + bias + ReLU : single (Cmid, 9*Cin+1) x (9*Cin+1, HW) matmul
    build_patches(x2d, cin, p0_ref)
    h = jnp.maximum(
        jnp.dot(w0_ref[...], p0_ref[...], preferred_element_type=jnp.float32),
        0.0)                                           # (Cmid, HW)

    # ---- conv1 + bias : CNA mode -> no activation after conv1
    build_patches(h, cmid, p1_ref)
    res = jnp.dot(w1_ref[...], p1_ref[...],
                  preferred_element_type=jnp.float32)  # (Cout, HW)

    # ---- residual add with scaling; lane-dense output store
    o_ref[0] = x2d + res_scale * res


def resnet_block(x_nchw, w0_hwio, b0, w1_hwio, b1, res_scale=1.0):
    """x_nchw: (N, C, H, W) float32. Weights in HWIO. Returns NCHW."""
    N, C, H, W = x_nchw.shape
    HW = H * W
    cin, cmid = w0_hwio.shape[2], w0_hwio.shape[3]
    cout = w1_hwio.shape[3]
    assert C == cin and cin == cout, "residual add requires in_nc == out_nc"

    # NCHW -> (N, C, H*W) is a free reshape (no transpose, no HBM pad pass).
    x_flat = x_nchw.reshape(N, C, HW).astype(jnp.float32)

    # HWIO -> (O, 9*I) rows matching the kernel tap order; bias appended as an
    # extra column (multiplied by the patches' constant ones row).
    w0r = jnp.transpose(w0_hwio, (3, 0, 1, 2)).reshape(cmid, 9 * cin)
    w0a = jnp.concatenate([w0r, b0.reshape(cmid, 1)], axis=1).astype(jnp.float32)
    w1r = jnp.transpose(w1_hwio, (3, 0, 1, 2)).reshape(cout, 9 * cmid)
    w1a = jnp.concatenate([w1r, b1.reshape(cout, 1)], axis=1).astype(jnp.float32)

    masks = _conv_masks(H, W)                          # (9, HW) f32

    kernel = functools.partial(_resnet_block_kernel, H=H, W=W, cin=cin,
                               cmid=cmid, cout=cout,
                               res_scale=float(res_scale))

    out_flat = pl.pallas_call(
        kernel,
        out_shape=jax.ShapeDtypeStruct((N, cout, HW), jnp.float32),
        grid_spec=pltpu.PrefetchScalarGridSpec(
            num_scalar_prefetch=0,
            grid=(N,),
            in_specs=[
                pl.BlockSpec((1, cin, HW), lambda n: (n, 0, 0)),
                pl.BlockSpec((cmid, 9 * cin + 1), lambda n: (0, 0)),
                pl.BlockSpec((cout, 9 * cmid + 1), lambda n: (0, 0)),
                pl.BlockSpec((9, HW), lambda n: (0, 0)),
            ],
            out_specs=pl.BlockSpec((1, cout, HW), lambda n: (n, 0, 0)),
            scratch_shapes=[
                pltpu.VMEM((9 * cin + 1, HW), jnp.float32),
                pltpu.VMEM((9 * cmid + 1, HW), jnp.float32),
            ],
        ),
        compiler_params=pltpu.CompilerParams(
            dimension_semantics=("parallel",)),
    )(x_flat, w0a, w1a, masks)

    # (N, Cout, H*W) -> NCHW is a free reshape (no transpose).
    return out_flat.reshape(N, cout, H, W)


def _reference(x_nchw, w0_hwio, b0, w1_hwio, b1, res_scale=1.0):
    """Pure-JAX reference (XLA conv) for validation."""
    x = jnp.transpose(x_nchw, (0, 2, 3, 1))
    dn = ("NHWC", "HWIO", "NHWC")
    h = jax.lax.conv_general_dilated(x, w0_hwio, (1, 1), "SAME",
                                     dimension_numbers=dn) + b0
    h = jnp.maximum(h, 0.0)
    r = jax.lax.conv_general_dilated(h, w1_hwio, (1, 1), "SAME",
                                     dimension_numbers=dn) + b1
    y = x + res_scale * r
    return jnp.transpose(y, (0, 3, 1, 2))


if __name__ == "__main__":
    # ResNetBlock(in_nc=4, mid_nc=8, out_nc=4, kernel_size=3, res_scale=0.5)
    N, Cin, Cmid, Cout, H, W = 2, 4, 8, 4, 16, 16
    res_scale = 0.5

    key = jax.random.PRNGKey(0)
    kx, k0, kb0, k1, kb1 = jax.random.split(key, 5)

    x = jax.random.normal(kx, (N, Cin, H, W), dtype=jnp.float32)
    # Deterministic weights in HWIO layout (equiv. to torch OIHW transposed).
    w0 = jax.random.normal(k0, (3, 3, Cin, Cmid), dtype=jnp.float32) * 0.1
    b0 = jax.random.normal(kb0, (Cmid,), dtype=jnp.float32) * 0.1
    w1 = jax.random.normal(k1, (3, 3, Cmid, Cout), dtype=jnp.float32) * 0.1
    b1 = jax.random.normal(kb1, (Cout,), dtype=jnp.float32) * 0.1

    out = resnet_block(x, w0, b0, w1, b1, res_scale=res_scale)
    out = jax.block_until_ready(out)

    ref = _reference(x, w0, b0, w1, b1, res_scale=res_scale)
    assert out.shape == (N, Cout, H, W)
    assert jnp.allclose(out, ref, rtol=1e-3, atol=1e-3), "mismatch vs reference"

    print("KERNEL_OK")
</pallas_src>

<mosaic_0001>
module attributes {stable_mosaic.version = 11 : i64} {
  func.func @_resnet_block_kernel(%arg0: i32, %arg1: memref<1x4x256xf32, #tpu.memory_space<vmem>>, %arg2: memref<8x37xf32, #tpu.memory_space<vmem>>, %arg3: memref<4x73xf32, #tpu.memory_space<vmem>>, %arg4: memref<9x256xf32, #tpu.memory_space<vmem>>, %arg5: memref<1x4x256xf32, #tpu.memory_space<vmem>>, %arg6: memref<37x256xf32, #tpu.memory_space<vmem>>, %arg7: memref<73x256xf32, #tpu.memory_space<vmem>>) attributes {dimension_semantics = [#tpu.dimension_semantics<parallel>], iteration_bounds = array<i64: 2>, scalar_prefetch = 0 : i64, scratch_operands = 2 : i64, tpu.core_type = #tpu.core_type<tc>, window_params = [{transform_indices = @transform_0, window_bounds = array<i64: 1, 4, 256>}, {pipeline_mode = #tpu.pipeline_mode<synchronous>, transform_indices = @transform_1, window_bounds = array<i64: 8, 37>}, {pipeline_mode = #tpu.pipeline_mode<synchronous>, transform_indices = @transform_2, window_bounds = array<i64: 4, 73>}, {pipeline_mode = #tpu.pipeline_mode<synchronous>, transform_indices = @transform_3, window_bounds = array<i64: 9, 256>}, {transform_indices = @transform_4, window_bounds = array<i64: 1, 4, 256>}]} {
    %c0 = arith.constant 0 : index
    %c0_0 = arith.constant 0 : index
    %c0_1 = arith.constant 0 : index
    %0 = vector.load %arg1[%c0, %c0_0, %c0_1] : memref<1x4x256xf32, #tpu.memory_space<vmem>>, vector<1x4x256xf32>
    %1 = vector.shape_cast %0 : vector<1x4x256xf32> to vector<4x256xf32>
    %c17_i32 = arith.constant 17 : i32
    %2 = tpu.dynamic_rotate %1 by %c17_i32 dim 1 : vector<4x256xf32>, i32 -> vector<4x256xf32>
    %c0_2 = arith.constant 0 : index
    %c0_3 = arith.constant 0 : index
    %3 = vector.load %arg4[%c0_2, %c0_3] : memref<9x256xf32, #tpu.memory_space<vmem>>, vector<1x256xf32>
    %4 = vector.broadcast %3 : vector<1x256xf32> to vector<4x256xf32>
    %5 = arith.mulf %2, %4 : vector<4x256xf32>
    %c0_4 = arith.constant 0 : index
    %c0_5 = arith.constant 0 : index
    %6 = vector.load %arg6[%c0_4, %c0_5] : memref<37x256xf32, #tpu.memory_space<vmem>>, vector<4x256xf32>
    tpu.vector_store %arg6[%c0_4, %c0_5], %5 {strides = array<i32>} : memref<37x256xf32, #tpu.memory_space<vmem>>, vector<4x256xf32>,
    %c16_i32 = arith.constant 16 : i32
    %7 = tpu.dynamic_rotate %1 by %c16_i32 dim 1 : vector<4x256xf32>, i32 -> vector<4x256xf32>
    %c1 = arith.constant 1 : index
    %c0_6 = arith.constant 0 : index
    %8 = vector.load %arg4[%c1, %c0_6] : memref<9x256xf32, #tpu.memory_space<vmem>>, vector<1x256xf32>
    %9 = vector.broadcast %8 : vector<1x256xf32> to vector<4x256xf32>
    %10 = arith.mulf %7, %9 : vector<4x256xf32>
    %c4 = arith.constant 4 : index
    %c0_7 = arith.constant 0 : index
    %11 = vector.load %arg6[%c4, %c0_7] : memref<37x256xf32, #tpu.memory_space<vmem>>, vector<4x256xf32>
    tpu.vector_store %arg6[%c4, %c0_7], %10 {strides = array<i32>} : memref<37x256xf32, #tpu.memory_space<vmem>>, vector<4x256xf32>,
    %c15_i32 = arith.constant 15 : i32
    %12 = tpu.dynamic_rotate %1 by %c15_i32 dim 1 : vector<4x256xf32>, i32 -> vector<4x256xf32>
    %c2 = arith.constant 2 : index
    %c0_8 = arith.constant 0 : index
    %13 = vector.load %arg4[%c2, %c0_8] : memref<9x256xf32, #tpu.memory_space<vmem>>, vector<1x256xf32>
    %14 = vector.broadcast %13 : vector<1x256xf32> to vector<4x256xf32>
    %15 = arith.mulf %12, %14 : vector<4x256xf32>
    %c8 = arith.constant 8 : index
    %c0_9 = arith.constant 0 : index
    %16 = vector.load %arg6[%c8, %c0_9] : memref<37x256xf32, #tpu.memory_space<vmem>>, vector<4x256xf32>
    tpu.vector_store %arg6[%c8, %c0_9], %15 {strides = array<i32>} : memref<37x256xf32, #tpu.memory_space<vmem>>, vector<4x256xf32>,
    %c1_i32 = arith.constant 1 : i32
    %17 = tpu.dynamic_rotate %1 by %c1_i32 dim 1 : vector<4x256xf32>, i32 -> vector<4x256xf32>
    %c3 = arith.constant 3 : index
    %c0_10 = arith.constant 0 : index
    %18 = vector.load %arg4[%c3, %c0_10] : memref<9x256xf32, #tpu.memory_space<vmem>>, vector<1x256xf32>
    %19 = vector.broadcast %18 : vector<1x256xf32> to vector<4x256xf32>
    %20 = arith.mulf %17, %19 : vector<4x256xf32>
    %c12 = arith.constant 12 : index
    %c0_11 = arith.constant 0 : index
    %21 = vector.load %arg6[%c12, %c0_11] : memref<37x256xf32, #tpu.memory_space<vmem>>, vector<4x256xf32>
    tpu.vector_store %arg6[%c12, %c0_11], %20 {strides = array<i32>} : memref<37x256xf32, #tpu.memory_space<vmem>>, vector<4x256xf32>,
    %c16 = arith.constant 16 : index
    %c0_12 = arith.constant 0 : index
    %22 = vector.load %arg6[%c16, %c0_12] : memref<37x256xf32, #tpu.memory_space<vmem>>, vector<4x256xf32>
    tpu.vector_store %arg6[%c16, %c0_12], %1 {strides = array<i32>} : memref<37x256xf32, #tpu.memory_space<vmem>>, vector<4x256xf32>,
    %c255_i32 = arith.constant 255 : i32
    %23 = tpu.dynamic_rotate %1 by %c255_i32 dim 1 : vector<4x256xf32>, i32 -> vector<4x256xf32>
    %c5 = arith.constant 5 : index
    %c0_13 = arith.constant 0 : index
    %24 = vector.load %arg4[%c5, %c0_13] : memref<9x256xf32, #tpu.memory_space<vmem>>, vector<1x256xf32>
    %25 = vector.broadcast %24 : vector<1x256xf32> to vector<4x256xf32>
    %26 = arith.mulf %23, %25 : vector<4x256xf32>
    %c20 = arith.constant 20 : index
    %c0_14 = arith.constant 0 : index
    %27 = vector.load %arg6[%c20, %c0_14] : memref<37x256xf32, #tpu.memory_space<vmem>>, vector<4x256xf32>
    tpu.vector_store %arg6[%c20, %c0_14], %26 {strides = array<i32>} : memref<37x256xf32, #tpu.memory_space<vmem>>, vector<4x256xf32>,
    %c241_i32 = arith.constant 241 : i32
    %28 = tpu.dynamic_rotate %1 by %c241_i32 dim 1 : vector<4x256xf32>, i32 -> vector<4x256xf32>
    %c6 = arith.constant 6 : index
    %c0_15 = arith.constant 0 : index
    %29 = vector.load %arg4[%c6, %c0_15] : memref<9x256xf32, #tpu.memory_space<vmem>>, vector<1x256xf32>
    %30 = vector.broadcast %29 : vector<1x256xf32> to vector<4x256xf32>
    %31 = arith.mulf %28, %30 : vector<4x256xf32>
    %c24 = arith.constant 24 : index
    %c0_16 = arith.constant 0 : index
    %32 = vector.load %arg6[%c24, %c0_16] : memref<37x256xf32, #tpu.memory_space<vmem>>, vector<4x256xf32>
    tpu.vector_store %arg6[%c24, %c0_16], %31 {strides = array<i32>} : memref<37x256xf32, #tpu.memory_space<vmem>>, vector<4x256xf32>,
    %c240_i32 = arith.constant 240 : i32
    %33 = tpu.dynamic_rotate %1 by %c240_i32 dim 1 : vector<4x256xf32>, i32 -> vector<4x256xf32>
    %c7 = arith.constant 7 : index
    %c0_17 = arith.constant 0 : index
    %34 = vector.load %arg4[%c7, %c0_17] : memref<9x256xf32, #tpu.memory_space<vmem>>, vector<1x256xf32>
    %35 = vector.broadcast %34 : vector<1x256xf32> to vector<4x256xf32>
    %36 = arith.mulf %33, %35 : vector<4x256xf32>
    %c28 = arith.constant 28 : index
    %c0_18 = arith.constant 0 : index
    %37 = vector.load %arg6[%c28, %c0_18] : memref<37x256xf32, #tpu.memory_space<vmem>>, vector<4x256xf32>
    tpu.vector_store %arg6[%c28, %c0_18], %36 {strides = array<i32>} : memref<37x256xf32, #tpu.memory_space<vmem>>, vector<4x256xf32>,
    %c239_i32 = arith.constant 239 : i32
    %38 = tpu.dynamic_rotate %1 by %c239_i32 dim 1 : vector<4x256xf32>, i32 -> vector<4x256xf32>
    %c8_19 = arith.constant 8 : index
    %c0_20 = arith.constant 0 : index
    %39 = vector.load %arg4[%c8_19, %c0_20] : memref<9x256xf32, #tpu.memory_space<vmem>>, vector<1x256xf32>
    %40 = vector.broadcast %39 : vector<1x256xf32> to vector<4x256xf32>
    %41 = arith.mulf %38, %40 : vector<4x256xf32>
    %c32 = arith.constant 32 : index
    %c0_21 = arith.constant 0 : index
    %42 = vector.load %arg6[%c32, %c0_21] : memref<37x256xf32, #tpu.memory_space<vmem>>, vector<4x256xf32>
    tpu.vector_store %arg6[%c32, %c0_21], %41 {strides = array<i32>} : memref<37x256xf32, #tpu.memory_space<vmem>>, vector<4x256xf32>,
    %cst = arith.constant 1.000000e+00 : f32
    %43 = vector.broadcast %cst : f32 to vector<1x256xf32>
    %c36 = arith.constant 36 : index
    %c0_22 = arith.constant 0 : index
    %44 = vector.load %arg6[%c36, %c0_22] : memref<37x256xf32, #tpu.memory_space<vmem>>, vector<1x256xf32>
    tpu.vector_store %arg6[%c36, %c0_22], %43 {strides = array<i32>} : memref<37x256xf32, #tpu.memory_space<vmem>>, vector<1x256xf32>,
    %c0_23 = arith.constant 0 : index
    %c0_24 = arith.constant 0 : index
    %45 = vector.load %arg2[%c0_23, %c0_24] : memref<8x37xf32, #tpu.memory_space<vmem>>, vector<8x37xf32>
    %c0_25 = arith.constant 0 : index
    %c0_26 = arith.constant 0 : index
    %46 = vector.load %arg6[%c0_25, %c0_26] : memref<37x256xf32, #tpu.memory_space<vmem>>, vector<37x256xf32>
    %cst_27 = arith.constant dense<0.000000e+00> : vector<8x256xf32>
    %47 = tpu.matmul %45, %46, %cst_27 {dimension_numbers = #tpu.dot_dimension_numbers<[1], [0], [0], [1], [0, 0, 1, 1], [], []>} : vector<8x37xf32>, vector<37x256xf32>, vector<8x256xf32> -> vector<8x256xf32>
    %cst_28 = arith.constant 0.000000e+00 : f32
    %48 = vector.broadcast %cst_28 : f32 to vector<8x256xf32>
    %49 = arith.maximumf %47, %48 : vector<8x256xf32>
    %c17_i32_29 = arith.constant 17 : i32
    %50 = tpu.dynamic_rotate %49 by %c17_i32_29 dim 1 : vector<8x256xf32>, i32 -> vector<8x256xf32>
    %c0_30 = arith.constant 0 : index
    %c0_31 = arith.constant 0 : index
    %51 = vector.load %arg4[%c0_30, %c0_31] : memref<9x256xf32, #tpu.memory_space<vmem>>, vector<1x256xf32>
    %52 = vector.broadcast %51 : vector<1x256xf32> to vector<8x256xf32>
    %53 = arith.mulf %50, %52 : vector<8x256xf32>
    %c0_32 = arith.constant 0 : index
    %c0_33 = arith.constant 0 : index
    %54 = vector.load %arg7[%c0_32, %c0_33] : memref<73x256xf32, #tpu.memory_space<vmem>>, vector<8x256xf32>
    tpu.vector_store %arg7[%c0_32, %c0_33], %53 {strides = array<i32>} : memref<73x256xf32, #tpu.memory_space<vmem>>, vector<8x256xf32>,
    %c16_i32_34 = arith.constant 16 : i32
    %55 = tpu.dynamic_rotate %49 by %c16_i32_34 dim 1 : vector<8x256xf32>, i32 -> vector<8x256xf32>
    %c1_35 = arith.constant 1 : index
    %c0_36 = arith.constant 0 : index
    %56 = vector.load %arg4[%c1_35, %c0_36] : memref<9x256xf32, #tpu.memory_space<vmem>>, vector<1x256xf32>
    %57 = vector.broadcast %56 : vector<1x256xf32> to vector<8x256xf32>
    %58 = arith.mulf %55, %57 : vector<8x256xf32>
    %c8_37 = arith.constant 8 : index
    %c0_38 = arith.constant 0 : index
    %59 = vector.load %arg7[%c8_37, %c0_38] : memref<73x256xf32, #tpu.memory_space<vmem>>, vector<8x256xf32>
    tpu.vector_store %arg7[%c8_37, %c0_38], %58 {strides = array<i32>} : memref<73x256xf32, #tpu.memory_space<vmem>>, vector<8x256xf32>,
    %c15_i32_39 = arith.constant 15 : i32
    %60 = tpu.dynamic_rotate %49 by %c15_i32_39 dim 1 : vector<8x256xf32>, i32 -> vector<8x256xf32>
    %c2_40 = arith.constant 2 : index
    %c0_41 = arith.constant 0 : index
    %61 = vector.load %arg4[%c2_40, %c0_41] : memref<9x256xf32, #tpu.memory_space<vmem>>, vector<1x256xf32>
    %62 = vector.broadcast %61 : vector<1x256xf32> to vector<8x256xf32>
    %63 = arith.mulf %60, %62 : vector<8x256xf32>
    %c16_42 = arith.constant 16 : index
    %c0_43 = arith.constant 0 : index
    %64 = vector.load %arg7[%c16_42, %c0_43] : memref<73x256xf32, #tpu.memory_space<vmem>>, vector<8x256xf32>
    tpu.vector_store %arg7[%c16_42, %c0_43], %63 {strides = array<i32>} : memref<73x256xf32, #tpu.memory_space<vmem>>, vector<8x256xf32>,
    %c1_i32_44 = arith.constant 1 : i32
    %65 = tpu.dynamic_rotate %49 by %c1_i32_44 dim 1 : vector<8x256xf32>, i32 -> vector<8x256xf32>
    %c3_45 = arith.constant 3 : index
    %c0_46 = arith.constant 0 : index
    %66 = vector.load %arg4[%c3_45, %c0_46] : memref<9x256xf32, #tpu.memory_space<vmem>>, vector<1x256xf32>
    %67 = vector.broadcast %66 : vector<1x256xf32> to vector<8x256xf32>
    %68 = arith.mulf %65, %67 : vector<8x256xf32>
    %c24_47 = arith.constant 24 : index
    %c0_48 = arith.constant 0 : index
    %69 = vector.load %arg7[%c24_47, %c0_48] : memref<73x256xf32, #tpu.memory_space<vmem>>, vector<8x256xf32>
    tpu.vector_store %arg7[%c24_47, %c0_48], %68 {strides = array<i32>} : memref<73x256xf32, #tpu.memory_space<vmem>>, vector<8x256xf32>,
    %c32_49 = arith.constant 32 : index
    %c0_50 = arith.constant 0 : index
    %70 = vector.load %arg7[%c32_49, %c0_50] : memref<73x256xf32, #tpu.memory_space<vmem>>, vector<8x256xf32>
    tpu.vector_store %arg7[%c32_49, %c0_50], %49 {strides = array<i32>} : memref<73x256xf32, #tpu.memory_space<vmem>>, vector<8x256xf32>,
    %c255_i32_51 = arith.constant 255 : i32
    %71 = tpu.dynamic_rotate %49 by %c255_i32_51 dim 1 : vector<8x256xf32>, i32 -> vector<8x256xf32>
    %c5_52 = arith.constant 5 : index
    %c0_53 = arith.constant 0 : index
    %72 = vector.load %arg4[%c5_52, %c0_53] : memref<9x256xf32, #tpu.memory_space<vmem>>, vector<1x256xf32>
    %73 = vector.broadcast %72 : vector<1x256xf32> to vector<8x256xf32>
    %74 = arith.mulf %71, %73 : vector<8x256xf32>
    %c40 = arith.constant 40 : index
    %c0_54 = arith.constant 0 : index
    %75 = vector.load %arg7[%c40, %c0_54] : memref<73x256xf32, #tpu.memory_space<vmem>>, vector<8x256xf32>
    tpu.vector_store %arg7[%c40, %c0_54], %74 {strides = array<i32>} : memref<73x256xf32, #tpu.memory_space<vmem>>, vector<8x256xf32>,
    %c241_i32_55 = arith.constant 241 : i32
    %76 = tpu.dynamic_rotate %49 by %c241_i32_55 dim 1 : vector<8x256xf32>, i32 -> vector<8x256xf32>
    %c6_56 = arith.constant 6 : index
    %c0_57 = arith.constant 0 : index
    %77 = vector.load %arg4[%c6_56, %c0_57] : memref<9x256xf32, #tpu.memory_space<vmem>>, vector<1x256xf32>
    %78 = vector.broadcast %77 : vector<1x256xf32> to vector<8x256xf32>
    %79 = arith.mulf %76, %78 : vector<8x256xf32>
    %c48 = arith.constant 48 : index
    %c0_58 = arith.constant 0 : index
    %80 = vector.load %arg7[%c48, %c0_58] : memref<73x256xf32, #tpu.memory_space<vmem>>, vector<8x256xf32>
    tpu.vector_store %arg7[%c48, %c0_58], %79 {strides = array<i32>} : memref<73x256xf32, #tpu.memory_space<vmem>>, vector<8x256xf32>,
    %c240_i32_59 = arith.constant 240 : i32
    %81 = tpu.dynamic_rotate %49 by %c240_i32_59 dim 1 : vector<8x256xf32>, i32 -> vector<8x256xf32>
    %c7_60 = arith.constant 7 : index
    %c0_61 = arith.constant 0 : index
    %82 = vector.load %arg4[%c7_60, %c0_61] : memref<9x256xf32, #tpu.memory_space<vmem>>, vector<1x256xf32>
    %83 = vector.broadcast %82 : vector<1x256xf32> to vector<8x256xf32>
    %84 = arith.mulf %81, %83 : vector<8x256xf32>
    %c56 = arith.constant 56 : index
    %c0_62 = arith.constant 0 : index
    %85 = vector.load %arg7[%c56, %c0_62] : memref<73x256xf32, #tpu.memory_space<vmem>>, vector<8x256xf32>
    tpu.vector_store %arg7[%c56, %c0_62], %84 {strides = array<i32>} : memref<73x256xf32, #tpu.memory_space<vmem>>, vector<8x256xf32>,
    %c239_i32_63 = arith.constant 239 : i32
    %86 = tpu.dynamic_rotate %49 by %c239_i32_63 dim 1 : vector<8x256xf32>, i32 -> vector<8x256xf32>
    %c8_64 = arith.constant 8 : index
    %c0_65 = arith.constant 0 : index
    %87 = vector.load %arg4[%c8_64, %c0_65] : memref<9x256xf32, #tpu.memory_space<vmem>>, vector<1x256xf32>
    %88 = vector.broadcast %87 : vector<1x256xf32> to vector<8x256xf32>
    %89 = arith.mulf %86, %88 : vector<8x256xf32>
    %c64 = arith.constant 64 : index
    %c0_66 = arith.constant 0 : index
    %90 = vector.load %arg7[%c64, %c0_66] : memref<73x256xf32, #tpu.memory_space<vmem>>, vector<8x256xf32>
    tpu.vector_store %arg7[%c64, %c0_66], %89 {strides = array<i32>} : memref<73x256xf32, #tpu.memory_space<vmem>>, vector<8x256xf32>,
    %cst_67 = arith.constant 1.000000e+00 : f32
    %91 = vector.broadcast %cst_67 : f32 to vector<1x256xf32>
    %c72 = arith.constant 72 : index
    %c0_68 = arith.constant 0 : index
    %92 = vector.load %arg7[%c72, %c0_68] : memref<73x256xf32, #tpu.memory_space<vmem>>, vector<1x256xf32>
    tpu.vector_store %arg7[%c72, %c0_68], %91 {strides = array<i32>} : memref<73x256xf32, #tpu.memory_space<vmem>>, vector<1x256xf32>,
    %c0_69 = arith.constant 0 : index
    %c0_70 = arith.constant 0 : index
    %93 = vector.load %arg3[%c0_69, %c0_70] : memref<4x73xf32, #tpu.memory_space<vmem>>, vector<4x73xf32>
    %c0_71 = arith.constant 0 : index
    %c0_72 = arith.constant 0 : index
    %94 = vector.load %arg7[%c0_71, %c0_72] : memref<73x256xf32, #tpu.memory_space<vmem>>, vector<73x256xf32>
    %cst_73 = arith.constant dense<0.000000e+00> : vector<4x256xf32>
    %95 = tpu.matmul %93, %94, %cst_73 {dimension_numbers = #tpu.dot_dimension_numbers<[1], [0], [0], [1], [0, 0, 1, 1], [], []>} : vector<4x73xf32>, vector<73x256xf32>, vector<4x256xf32> -> vector<4x256xf32>
    %cst_74 = arith.constant 5.000000e-01 : f32
    %96 = vector.broadcast %cst_74 : f32 to vector<4x256xf32>
    %97 = arith.mulf %96, %95 : vector<4x256xf32>
    %98 = arith.addf %1, %97 : vector<4x256xf32>
    %c0_75 = arith.constant 0 : index
    %c0_76 = arith.constant 0 : index
    %c0_77 = arith.constant 0 : index
    %99 = vector.load %arg5[%c0_75, %c0_76, %c0_77] : memref<1x4x256xf32, #tpu.memory_space<vmem>>, vector<1x4x256xf32>
    %100 = vector.shape_cast %99 : vector<1x4x256xf32> to vector<4x256xf32>
    %101 = vector.shape_cast %98 : vector<4x256xf32> to vector<1x4x256xf32>
    tpu.vector_store %arg5[%c0_75, %c0_76, %c0_77], %101 {strides = array<i32>} : memref<1x4x256xf32, #tpu.memory_space<vmem>>, vector<1x4x256xf32>,
    return
  }
  func.func @transform_0(%arg0: i32) -> (i32, i32, i32) {
    %c0_i32 = arith.constant 0 : i32
    %c0_i32_0 = arith.constant 0 : i32
    %c0_i32_1 = arith.constant 0 : i32
    return %arg0, %c0_i32, %c0_i32_0 : i32, i32, i32
  }
  func.func @transform_1(%arg0: i32) -> (i32, i32) {
    %c0_i32 = arith.constant 0 : i32
    %c0_i32_0 = arith.constant 0 : i32
    %c0_i32_1 = arith.constant 0 : i32
    return %c0_i32, %c0_i32_0 : i32, i32
  }
  func.func @transform_2(%arg0: i32) -> (i32, i32) {
    %c0_i32 = arith.constant 0 : i32
    %c0_i32_0 = arith.constant 0 : i32
    %c0_i32_1 = arith.constant 0 : i32
    return %c0_i32, %c0_i32_0 : i32, i32
  }
  func.func @transform_3(%arg0: i32) -> (i32, i32) {
    %c0_i32 = arith.constant 0 : i32
    %c0_i32_0 = arith.constant 0 : i32
    %c0_i32_1 = arith.constant 0 : i32
    return %c0_i32, %c0_i32_0 : i32, i32
  }
  func.func @transform_4(%arg0: i32) -> (i32, i32, i32) {
    %c0_i32 = arith.constant 0 : i32
    %c0_i32_0 = arith.constant 0 : i32
    %c0_i32_1 = arith.constant 0 : i32
    return %arg0, %c0_i32, %c0_i32_0 : i32, i32, i32
  }
}

</mosaic_0001>

<bundles_post_ra>
// kernel: tpu_custom_call.1
= control target key start
LH: loop header
LB: loop body
LE: loop exit
PB: predicated region body
PF: predicated region fallthrough
CT: control target
= control target key end

     0   :  { %9 = vsyncpa [#allocation5], 0  ;;  %s1693_s0 = inlined_call_operand.hbm [shape: f32[2,4,256], index: 0, kind: input, shape index: {}]   ;;  %s1694_s1 = inlined_call_operand.hbm [shape: f32[8,37], index: 1, kind: input, shape index: {}]   ;;  %s1695_s2 = inlined_call_operand.hbm [shape: f32[4,73], index: 2, kind: input, shape index: {}]   ;;  %s1696_s3 = inlined_call_operand.hbm [shape: f32[9,256], index: 3, kind: input, shape index: {}]   ;;  %s1697_s4 = inlined_call_operand.hbm [shape: f32[2,4,256], index: 4, kind: output, shape index: {}]  }
   0x1   :  { %11 = vsyncpa [#allocation5 + $0x1], 0 }
   0x2   :  { %12 = vsyncpa [#allocation8], 0 }
   0x3   :  { %13 = vsyncpa [#allocation11], 0 }
   0x4   :  { %14 = vsyncpa [#allocation6], 0 }
   0x5   :  { %16 = vsyncpa [#allocation6 + $0x1], 0  ;;  %s1325_s15 = smov 0   ;;  %s1327_s16 = smov 0  }
   0x6   :  { %s1329_s17 = smov 0   ;;  %s1331_s18 = smov 0  }
   0x7 LB: > { %s1346_s19 = sadd.s32 4294967295, %s1281_s18   ;;  %s985_s20 = sadd.s32 4294967294, %s1281_s18   ;;  %s1281_s18 = sphi %s1331_s18, %s1721_s18   ;;  %s1277_s17 = sphi %s1329_s17, %s1720_s17   ;;  %s1273_s16 = sphi %s1327_s16, %s1719_s16   ;;  %s1269_s15 = sphi %s1325_s15, %s1718_s15  }
   0x8   : > { %p42_p0 = scmp.ne.s32.totalorder %s1273_s16, %s1269_s15  ;;  %p1698_p1 = scmp.eq.s32.totalorder %s1346_s19, 0 }
   0x9   : > { %p135_p3 = scmp.eq.s32.totalorder %s985_s20, 1  ;;  %p986_p5 = scmp.ge.s32.totalorder %s1281_s18, 1 }
   0xa   : > { %p1355_p4 = por %p1698_p1, %p42_p0  ;;  %p142_p7 = scmp.lt.s32.totalorder %s1281_s18, 3 }
   0xb   : > { %p1360_p6 = por %p135_p3, %p42_p0  ;;  %s1283_s24 = smov [#allocation7]  }
   0xc   : > { %s1702_s21 = scalar_select %p1355_p4, 1, 0 }
   0xd   : > { %s1703_s22 = scalar_select %p1360_p6, 1, 0 }
   0xe   : > { %p1365_p8 = pnand %p986_p5, %p142_p7  ;;  %s155_s25 = sshll.u32 %s1283_s24, 4  ;;  %s156_s25 = int_to_ptr.vmem [resolvable:$true] %s155_s25 }
   0xf   : > { %s1284_s26 = smov [#allocation9]   ;;  %s1285_s29 = smov [#allocation10]  }
  0x10   : > { %s1704_s23 = scalar_select %p1365_p8, 1, 0 }
  0x11   : > { %p1029_p10 = pneg %p1365_p8  ;;  %s166_s27 = sshll.u32 %s1284_s26, 4  ;;  %s167_s27 = int_to_ptr.vmem [resolvable:$true] %s166_s27 }
  0x12   : > { %s176_s30 = sshll.u32 %s1285_s29, 4  ;;  %s1114_s5 = scalar_lea.vmem %s156_s25, 128  ;;  %s1378_s30 = int_to_ptr.vmem [resolvable:$true] %s176_s30 }
  0x13   : > { %p1374_p11 = pnand %p1029_p10, %p1698_p1  ;;  %p1115_p13 = scmp.ne.s32.totalorder %s156_s25, %s1114_s5 }
  0x14   : > { %p1122_p5 = scmp.lt.s32.totalorder %s156_s25, %s156_s25  ;;  %p1123_p7 = scmp.lt.s32.totalorder %s1114_s5, %s1114_s5 }
  0x15   : > { %p1105_p12 = pneg %p1374_p11 }
  0x16   : > { %p1124_p10 = por %p1123_p7, %p1122_p5 }
  0x17   : > { %p1117_p0 = pnand %p1115_p13, %p1105_p12 }
  0x19   : > { %p1118_p3 = pneg %p1117_p0 }
  0x1b   : > { %p1125_p9 = pnand %p1124_p10, %p1118_p3 }
  0x1d   : > { %1128 = shalt.err (!%p1125_p9)
}
  0x1e   : > { %1032 = dma.hbm_to_vmem [thread:$0]  (!%p1374_p11), %s1694_s1, 128, %s156_s25, [#allocation8]  }
  0x1f   : > { %s1140_s8 = scalar_lea.vmem %s167_s27, 64  ;;  %p1148_p13 = scmp.lt.s32.totalorder %s167_s27, %s167_s27 }
  0x20   : > { %p1141_p1 = scmp.ne.s32.totalorder %s167_s27, %s1140_s8  ;;  %p1149_p0 = scmp.lt.s32.totalorder %s1140_s8, %s1140_s8 }
  0x22   : > { %p1143_p2 = pnand %p1141_p1, %p1105_p12  ;;  %p1150_p4 = por %p1149_p0, %p1148_p13 }
  0x24   : > { %p1144_p6 = pneg %p1143_p2 }
  0x26   : > { %p1151_p8 = pnand %p1150_p4, %p1144_p6 }
  0x28   : > { %1154 = shalt.err (!%p1151_p8)
}
  0x29   : > { %1035 = dma.hbm_to_vmem [thread:$0]  (!%p1374_p11), %s1695_s2, 64, %s167_s27, [#allocation8]  }
  0x2a   : > { %s1166_s11 = scalar_lea.vmem %s1378_s30, 512  ;;  %p1174_p3 = scmp.lt.s32.totalorder %s1378_s30, %s1378_s30 }
  0x2b   : > { %p1167_p9 = scmp.ne.s32.totalorder %s1378_s30, %s1166_s11  ;;  %p1175_p4 = scmp.lt.s32.totalorder %s1166_s11, %s1166_s11 }
  0x2d   : > { %p1169_p1 = pnand %p1167_p9, %p1105_p12  ;;  %p1176_p6 = por %p1175_p4, %p1174_p3 }
  0x2f   : > { %p1170_p2 = pneg %p1169_p1 }
  0x31   : > { %p1177_p8 = pnand %p1176_p6, %p1170_p2 }
  0x33   : > { %1180 = shalt.err (!%p1177_p8)
}
  0x34   : > { %s1286_s12 = smov 256   ;;  %s1287_s13 = smov 16  }
  0x35   : > { %1038 = dma.hbm_to_vmem [thread:$0]  (!%p1374_p11), %s1696_s3, 512, %s1378_s30, [#allocation11], %s1286_s12, %s1286_s12, %s1287_s13  }
  0x36   : > { %s1412_s24 = sadd.s32 1, %s1281_s18   ;;  %s29_s26 = sadd.s32 1, %s1277_s17 }
  0x37   : > { %s26_s25 = ssub.s32 %s1281_s18, %s1412_s24  ;;  %p36_p5 = scmp.ne.s32.totalorder %s1277_s17, %s1273_s16 }
  0x38   : > { %p27_p12 = scmp.eq.s32.totalorder %s26_s25, 0  ;;  %p37_p7 = scmp.eq.s32.totalorder %s1281_s18, 0 }
  0x39   : > { %p1050_p10 = scmp.lt.s32.totalorder %s1281_s18, 2  ;;  %p1706_p0 = scmp.eq.s32.totalorder %s1346_s19, 1 }
  0x3a   : > { %s1422_s27 = scalar_select %p27_p12, %s1277_s17, %s29_s26  }
  0x3b   : > { %p38_p13 = por %p37_p7, %p36_p5  ;;  %p1426_p9 = por %p1706_p0, %p36_p5 }
  0x3c   : > { %s190_s28 = sand.u32 1, %s1277_s17   ;;  %s1011_s5 = sshll.u32 %s1281_s18, 7 }
  0x3d   : > { %s1707_s29 = scalar_select %p1426_p9, 1, 0 }
  0x3e   : > { %s991_s30 = sshll.u32 %s190_s28, 3  ;;  %s1435_s8 = scalar_lea.hbm %s1693_s0, %s1011_s5 }
  0x3f   : > { %s194_s9 = scalar_lea.vmem [#allocation4], %s991_s30  ;;  %p1437_p11 = pnand %p1050_p10, %p38_p13 }
  0x40   : > { %s202_s10 = sshll.u32 %s194_s9, 4  ;;  %s191_s12 = scalar_lea.sflag [#allocation5], %s190_s28  ;;  %s203_s10 = int_to_ptr.vmem [resolvable:$true] %s202_s10 }
  0x41   : > { %s1181_s13 = scalar_lea.hbm %s1435_s8, 128  ;;  %p1183_p2 = pneg %p1437_p11 }
  0x42   : > { %p1182_p1 = scmp.ne.s32.totalorder %s1435_s8, %s1181_s13  ;;  %s1186_s25 = scalar_lea.hbm %s1693_s0, 256 }
  0x43   : > { %p1187_p6 = scmp.lt.s32.totalorder %s1435_s8, %s1693_s0  ;;  %p1188_p8 = scmp.lt.s32.totalorder %s1186_s25, %s1181_s13 }
  0x44   : > { %p1184_p3 = pnand %p1183_p2, %p1182_p1 }
  0x45   : > { %p1189_p12 = por %p1188_p8, %p1187_p6 }
  0x46   : > { %p1185_p4 = pneg %p1184_p3 }
  0x48   : > { %p1190_p5 = pnand %p1189_p12, %p1185_p4 }
  0x4a   : > { %1193 = shalt.err (!%p1190_p5)
}
  0x4b   : > { %s1194_s30 = scalar_lea.vmem %s203_s10, 128  ;;  %s1288_s28 = smov [#allocation4]  }
  0x4c   : > { %p1195_p7 = scmp.ne.s32.totalorder %s203_s10, %s1194_s30  ;;  %s1199_s6 = sshll.u32 %s1288_s28, 4  ;;  %s1200_s6 = int_to_ptr.vmem [resolvable:$false] %s1199_s6 }
  0x4d   : > { %s1201_s7 = scalar_lea.vmem %s1200_s6, 256  ;;  %p1202_p0 = scmp.lt.s32.totalorder %s203_s10, %s1200_s6 }
  0x4e   : > { %p1197_p10 = pnand %p1195_p7, %p1183_p2  ;;  %p1203_p1 = scmp.lt.s32.totalorder %s1201_s7, %s1194_s30 }
  0x50   : > { %p1198_p13 = pneg %p1197_p10  ;;  %p1204_p3 = por %p1203_p1, %p1202_p0 }
  0x52   : > { %p1205_p9 = pnand %p1204_p3, %p1198_p13 }
  0x54   : > { %1208 = shalt.err (!%p1205_p9)
}
  0x55   : > { %1042 = dma.hbm_to_vmem [thread:$0]  (!%p1437_p11), %s1435_s8, 128, %s203_s10, %s191_s12  }
  0x56   : > { %p1709_p4 = scmp.ne.s32.totalorder %s1704_s23, 0 }
  0x57   : > { %s1458_s9 = sand.u32 (!%p1709_p4), 1, %s1273_s16   ;;  %p1710_p2 = scmp.ne.s32.totalorder (!%p1709_p4), %s1702_s21, 0 }
  0x58   : > { %211 = sbr.rel (%p1709_p4) target bundleno = 816 (0x330), region = 36  ;;  %s995_s13 = sshll.u32 (!%p1709_p4), %s1458_s9, 3 }
  0x59   : > { %s214_s14 = scalar_lea.sflag (!%p1709_p4), [#allocation5], %s1458_s9  ;;  %s217_s20 = scalar_lea.vmem (!%p1709_p4), [#allocation4], %s995_s13 }
  0x5d   : > { %1252 = dma.done.wait (%p1710_p2), %s214_s14, 128  }
  0x5e   : > { %1254 = vsyncadd (%p1710_p2), %s214_s14, 4294967168  ;;  %p1711_p9 = scmp.eq.s32.totalorder %s1346_s19, 0 }
  0x60   : > { %1256 = dma.done.wait (%p1711_p9), [#allocation8], 192   ;;  %p1712_p11 = pmov %p1711_p9 }
  0x61   : > { %p1713_p6 = pmov %p1711_p9 }
  0x62   : > { %1258 = vsyncadd (%p1712_p11), [#allocation8], 4294967104 }
  0x63   : > { %1260 = dma.done.wait (%p1713_p6), [#allocation11], 512   ;;  %p1714_p8 = pmov %p1713_p6 }
  0x64   : > { %v262_v0 = vlaneseq  ;;  %v1289_v1 = vmov 1.0   ;;  %v1476_v2 = vld [vmem:[%s217_s20] sm:$0xff]  ;;  %s1290_s21 = smov 111   ;;  %s1291_s23 = smov 112   ;;  %v1297_v4 = vmov 0.0   ;;  %vm499_vm5 = vcmask 1044480  }
  0x65   : > { %1262 = vsyncadd (%p1714_p8), [#allocation11], 4294966784  ;;  %453 = vrot.lane.b32.xlu1 %v1476_v2, %s1290_s21  ;;  %367 = vst [vmem:[#allocation2 + $0x20] sm:$0xf] %v1476_v2  ;;  %423 = vrot.lane.b32.xlu0 %v1476_v2, %s1291_s23  ;;  %v256_v3 = vcombine.high %v1476_v2, %v1476_v2  ;;  %s1292_s8 = smov 127   ;;  %s1293_s10 = smov 113  }
  0x66   : > { %vm479_vm0 = vcmp.lt.s32.totalorder %v262_v0, 256  ;;  %s1294_s11 = smov 1   ;;  %s1295_s12 = smov 16   ;;  %570 = vmatprep.mubr.f32.mxu0 %v1297_v4  ;;  %856 = vmatprep.mubr.f32.mxu1 %v1297_v4  ;;  %v270_v5 = vshrl.u32 %v262_v0, 7  ;;  %v1505_v6 = vand.u32 127, %v262_v0  ;;  %vm495_vm10 = vcmask 302080  }
  0x67   : > { %482 = vst.msk [vmem:[#allocation2 + $0x44] ss:$8 sm:$0x3] %vm479_vm0, %v1289_v1  ;;  %758 = vst.msk [vmem:[#allocation3 + $0x90] ss:$8 sm:$0x3] %vm479_vm0, %v1289_v1 }
  0x68   : > { %368 = vst [vmem:[#allocation2 + $0x28] sm:$0xf] %v256_v3  ;;  %s1296_s25 = smov 15   ;;  %s1298_s26 = smov 17   ;;  %v1507_v7 = vsub.s32 0, %v270_v5  ;;  %v1509_v8 = vsub.s32 1, %v270_v5 }
  0x69   : > { %369 = vrot.lane.b32.xlu0 %v1476_v2, %s1292_s8  ;;  %455 = vrot.lane.b32.xlu1 %v256_v3, %s1290_s21  ;;  %v461_v9 = vld [vmem:[#allocation10 + $0x10] ss:$8 sm:$0x3]  ;;  %vm457_vm1 = vcmp.lt.s32.totalorder %v1505_v6, 111  ;;  %vm373_vm2 = vcmp.lt.s32.totalorder %v1505_v6, 127  ;;  %vm427_vm3 = vcmp.lt.s32.totalorder %v1505_v6, 112 }
  0x6a   : > { %v466_v12 = vrot.slane %v461_v9, %v1507_v7  ;;  %v470_v13 = vrot.slane %v461_v9, %v1509_v8  ;;  %v377_v14 = vld [vmem:[#allocation10 + $0x5] ss:$8 sm:$0x3]  ;;  %v431_v15 = vld [vmem:[#allocation10 + $0x7] ss:$8 sm:$0x3] }
  0x6b   : > { %v382_v20 = vrot.slane %v377_v14, %v1507_v7  ;;  %v386_v21 = vrot.slane %v377_v14, %v1509_v8  ;;  %v407_v22 = vld [vmem:[#allocation10 + $0x6] ss:$8 sm:$0x3]  ;;  %v436_v25 = vrot.slane %v431_v15, %v1507_v7  ;;  %v440_v26 = vrot.slane %v431_v15, %v1509_v8  ;;  %v345_v39 = vld [vmem:[#allocation10 + $0x3] ss:$8 sm:$0x3] }
  0x6c   : > { %vm403_vm4 = vcmp.lt.s32.totalorder %v1505_v6, 113  ;;  %v412_v29 = vrot.slane %v407_v22, %v1507_v7  ;;  %v416_v30 = vrot.slane %v407_v22, %v1509_v8  ;;  %vm341_vm6 = vcmp.lt.s32.totalorder %v1505_v6, 1  ;;  %v291_v52 = vld [vmem:[#allocation10 + $0x1] ss:$8 sm:$0x3]  ;;  %s1012_s5 = sshll.u32 %s1346_s19, 7 }
  0x6d   : > { %371 = vrot.lane.b32.xlu1 %v256_v3, %s1292_s8  ;;  %425 = vrot.lane.b32.xlu0 %v256_v3, %s1291_s23  ;;  %v350_v50 = vrot.slane %v345_v39, %v1507_v7  ;;  %v354_v51 = vrot.slane %v345_v39, %v1509_v8  ;;  %vm287_vm7 = vcmp.lt.s32.totalorder %v1505_v6, 16  ;;  %v296_v61 = vrot.slane %v291_v52, %v1507_v7  ;;  %v321_v63 = vld [vmem:[#allocation10 + $0x2] ss:$8 sm:$0x3]  ;;  %v484_v39 = vld [vmem:[#allocation7] sm:$0xff]  ;;  %s253_s30 = scalar_lea.vmem [#allocation12], %s995_s13  ;;  %s884_s14 = scalar_lea.hbm %s1697_s4, %s1012_s5 }
  0x6e   : > { %v300_v62 = vrot.slane %v291_v52, %v1509_v8  ;;  %vm317_vm8 = vcmp.lt.s32.totalorder %v1505_v6, 15  ;;  %vm264_vm9 = vcmp.lt.s32.totalorder %v1505_v6, 17  ;;  %vm785_vm11 = vcmask 1040384   ;;  %s886_s28 = sshll.u32 %s253_s30, 4  ;;  %s872_s20 = scalar_lea.sflag [#allocation6], %s1458_s9  ;;  %s887_s28 = int_to_ptr.vmem [resolvable:$true] %s886_s28 }
  0x6f   : > { %vm781_vm12 = vcmask 596992   ;;  %p1715_p5 = scmp.ne.s32.totalorder %s1707_s29, 0 }
  0x71   : > { %401 = vrot.lane.b32.xlu1 %v256_v3, %s1293_s10  ;;  %399 = vrot.lane.b32.xlu0 %v1476_v2, %s1293_s10 }
  0x75   : > { %339 = vrot.lane.b32.xlu1 %v256_v3, %s1294_s11  ;;  %337 = vrot.lane.b32.xlu0 %v1476_v2, %s1294_s11 }
  0x79   : > { %285 = vrot.lane.b32.xlu1 %v256_v3, %s1295_s12  ;;  %283 = vrot.lane.b32.xlu0 %v1476_v2, %s1295_s12 }
  0x7d   : > { %315 = vrot.lane.b32.xlu1 %v256_v3, %s1296_s25  ;;  %313 = vrot.lane.b32.xlu0 %v1476_v2, %s1296_s25 }
  0x81   : > { %260 = vrot.lane.b32.xlu1 %v256_v3, %s1298_s26  ;;  %258 = vrot.lane.b32.xlu0 %v1476_v2, %s1298_s26 }
  0xd7   : > { %v454_v10 = vpop.permute.xlu1 %453  ;;  %v424_v11 = vpop.permute.xlu0 %423 }
  0xdb   : > { %v370_v16 = vpop.permute.xlu0 %369  ;;  %v456_v17 = vpop.permute.xlu1 %455 }
  0xdc   : > { %v458_v18 = vsel %vm457_vm1, %v454_v10, %v456_v17  ;;  %v459_v19 = vsel %vm457_vm1, %v456_v17, %v454_v10 }
  0xdd   : > { %v473_v23 = vmul.f32 %v466_v12, %v458_v18  ;;  %v474_v24 = vmul.f32 %v470_v13, %v459_v19  ;;  %v326_v12 = vrot.slane %v321_v63, %v1507_v7  ;;  %v330_v13 = vrot.slane %v321_v63, %v1509_v8 }
  0xdf   : > { %475 = vst [vmem:[#allocation2 + $0x40] sm:$0xf] %v473_v23  ;;  %476 = vst [vmem:[#allocation2 + $0x48] sm:$0xf] %v474_v24  ;;  %v372_v27 = vpop.permute.xlu1 %371  ;;  %v426_v28 = vpop.permute.xlu0 %425 }
  0xe0   : > { %v374_v31 = vsel %vm373_vm2, %v370_v16, %v372_v27  ;;  %v375_v32 = vsel %vm373_vm2, %v372_v27, %v370_v16  ;;  %v428_v33 = vsel %vm427_vm3, %v424_v11, %v426_v28  ;;  %v429_v34 = vsel %vm427_vm3, %v426_v28, %v424_v11  ;;  %v267_v16 = vld [vmem:[#allocation10] ss:$8 sm:$0x3] }
  0xe1   : > { %v389_v35 = vmul.f32 %v382_v20, %v374_v31  ;;  %v390_v36 = vmul.f32 %v386_v21, %v375_v32  ;;  %v443_v37 = vmul.f32 %v436_v25, %v428_v33  ;;  %v444_v38 = vmul.f32 %v440_v26, %v429_v34 }
  0xe2   : > { %v272_v27 = vrot.slane %v267_v16, %v1507_v7  ;;  %v276_v28 = vrot.slane %v267_v16, %v1509_v8 }
  0xe3   : > { %v393_v40 = vrot.slane %v389_v35, 4  ;;  %v394_v41 = vrot.slane %v390_v36, 4  ;;  %v447_v42 = vrot.slane %v443_v37, 4  ;;  %v448_v43 = vrot.slane %v444_v38, 4  ;;  %v402_v44 = vpop.permute.xlu1 %401  ;;  %v400_v45 = vpop.permute.xlu0 %399 }
  0xe4   : > { %v404_v46 = vsel %vm403_vm4, %v400_v45, %v402_v44  ;;  %v405_v47 = vsel %vm403_vm4, %v402_v44, %v400_v45 }
  0xe5   : > { %397 = vst [vmem:[#allocation2 + $0x20] sm:$0xf0] %v393_v40  ;;  %398 = vst [vmem:[#allocation2 + $0x28] sm:$0xf0] %v394_v41  ;;  %v419_v48 = vmul.f32 %v412_v29, %v404_v46  ;;  %v420_v49 = vmul.f32 %v416_v30, %v405_v47  ;;  %v780_v40 = vld [vmem:[#allocation3 + $0x98] sm:$0x1] }
  0xe6   : > { %451 = vst [vmem:[#allocation2 + $0x30] sm:$0xf0] %v447_v42  ;;  %452 = vst [vmem:[#allocation2 + $0x38] sm:$0xf0] %v448_v43  ;;  %v494_v53 = vld [vmem:[#allocation2 + $0x48] sm:$0x1f]  ;;  %1003 = vmatprep.subr.msk.mxu1 %vm785_vm11, %v780_v40 }
  0xe7   : > { %v493_v54 = vld [vmem:[#allocation2 + $0x40] sm:$0x1f]  ;;  %421 = vst [vmem:[#allocation2 + $0x30] sm:$0xf] %v419_v48  ;;  %422 = vst [vmem:[#allocation2 + $0x38] sm:$0xf] %v420_v49  ;;  %1000 = vmatprep.subr.msk.mxu0 %vm499_vm5, %v494_v53  ;;  %v340_v55 = vpop.permute.xlu1 %339  ;;  %v338_v56 = vpop.permute.xlu0 %337 }
  0xe8   : > { %v342_v57 = vsel %vm341_vm6, %v338_v56, %v340_v55  ;;  %v343_v58 = vsel %vm341_vm6, %v340_v55, %v338_v56  ;;  %1001 = vmatpush1.msk.msra.mxu0 %vm499_vm5, %v493_v54  ;;  %v779_v41 = vld [vmem:[#allocation3 + $0x90] sm:$0x1]  ;;  %v741_v46 = vld [vmem:[#allocation10 + $0x10] ss:$8 sm:$0x3] }
  0xe9   : > { %v357_v59 = vmul.f32 %v350_v50, %v343_v58  ;;  %v358_v60 = vmul.f32 %v354_v51, %v342_v57  ;;  %1004 = vmatpush1.msk.msra.mxu1 %vm785_vm11, %v779_v41  ;;  %v746_v48 = vrot.slane %v741_v46, %v1507_v7  ;;  %v750_v49 = vrot.slane %v741_v46, %v1509_v8  ;;  %v719_v50 = vld [vmem:[#allocation10 + $0x7] ss:$8 sm:$0x3] }
  0xea   : > { %v724_v57 = vrot.slane %v719_v50, %v1507_v7  ;;  %v728_v58 = vrot.slane %v719_v50, %v1509_v8 }
  0xeb   : > { %v361_v0 = vrot.slane %v357_v59, 4  ;;  %v362_v1 = vrot.slane %v358_v60, 4  ;;  %v286_v3 = vpop.permute.xlu1 %285  ;;  %v284_v4 = vpop.permute.xlu0 %283  ;;  %v697_v59 = vld [vmem:[#allocation10 + $0x6] ss:$8 sm:$0x3] }
  0xec   : > { %v288_v5 = vsel %vm287_vm7, %v284_v4, %v286_v3  ;;  %v289_v9 = vsel %vm287_vm7, %v286_v3, %v284_v4  ;;  %v490_v23 = vld [vmem:[#allocation2 + $0x28] sm:$0xff]  ;;  %v489_v26 = vld [vmem:[#allocation2 + $0x20] sm:$0xff]  ;;  %v702_v3 = vrot.slane %v697_v59, %v1507_v7  ;;  %v706_v4 = vrot.slane %v697_v59, %v1509_v8 }
  0xed   : > { %365 = vst [vmem:[#allocation2 + $0x10] sm:$0xf0] %v361_v0  ;;  %366 = vst [vmem:[#allocation2 + $0x18] sm:$0xf0] %v362_v1  ;;  %v303_v10 = vmul.f32 %v296_v61, %v289_v9  ;;  %v304_v11 = vmul.f32 %v300_v62, %v288_v5 }
  0xee   : > { %v492_v14 = vld [vmem:[#allocation2 + $0x38] sm:$0xff]  ;;  %v491_v15 = vld [vmem:[#allocation2 + $0x30] sm:$0xff] }
  0xef   : > { %v307_v17 = vrot.slane %v303_v10, 4  ;;  %v308_v18 = vrot.slane %v304_v11, 4  ;;  %v316_v19 = vpop.permute.xlu1 %315  ;;  %530 = vmatprep.subr.mxu0 %v492_v14  ;;  %v314_v20 = vpop.permute.xlu0 %313  ;;  %v675_v5 = vld [vmem:[#allocation10 + $0x5] ss:$8 sm:$0x3] }
  0xf0   : > { %v318_v21 = vsel %vm317_vm8, %v314_v20, %v316_v19  ;;  %v319_v22 = vsel %vm317_vm8, %v316_v19, %v314_v20  ;;  %531 = vmatpush1.msra.mxu0 %v491_v15  ;;  %v680_v15 = vrot.slane %v675_v5, %v1507_v7  ;;  %v684_v16 = vrot.slane %v675_v5, %v1509_v8 }
  0xf1   : > { %311 = vst [vmem:[#allocation2] sm:$0xf0] %v307_v17  ;;  %312 = vst [vmem:[#allocation2 + $0x8] sm:$0xf0] %v308_v18  ;;  %v333_v24 = vmul.f32 %v326_v12, %v319_v22  ;;  %v334_v25 = vmul.f32 %v330_v13, %v318_v21  ;;  %532 = vmatprep.subr.mxu0 %v490_v23 }
  0xf2   : > { %533 = vmatpush1.msra.mxu0 %v489_v26  ;;  %v651_v17 = vld [vmem:[#allocation10 + $0x3] ss:$8 sm:$0x3]  ;;  %v629_v26 = vld [vmem:[#allocation10 + $0x2] ss:$8 sm:$0x3] }
  0xf3   : > { %335 = vst [vmem:[#allocation2 + $0x10] sm:$0xf] %v333_v24  ;;  %336 = vst [vmem:[#allocation2 + $0x18] sm:$0xf] %v334_v25  ;;  %v261_v29 = vpop.permute.xlu1 %260  ;;  %v259_v30 = vpop.permute.xlu0 %258  ;;  %v656_v24 = vrot.slane %v651_v17, %v1507_v7  ;;  %v660_v25 = vrot.slane %v651_v17, %v1509_v8 }
  0xf4   : > { %v265_v31 = vsel %vm264_vm9, %v259_v30, %v261_v29  ;;  %v266_v32 = vsel %vm264_vm9, %v261_v29, %v259_v30 }
  0xf5   : > { %v279_v33 = vmul.f32 %v272_v27, %v266_v32  ;;  %v280_v34 = vmul.f32 %v276_v28, %v265_v31 }
  0xf7   : > { %281 = vst [vmem:[#allocation2] sm:$0xf] %v279_v33  ;;  %282 = vst [vmem:[#allocation2 + $0x8] sm:$0xf] %v280_v34  ;;  %v634_v33 = vrot.slane %v629_v26, %v1507_v7  ;;  %v638_v34 = vrot.slane %v629_v26, %v1509_v8 }
  0xfa   : > { %v488_v35 = vld [vmem:[#allocation2 + $0x18] sm:$0xff]  ;;  %v487_v36 = vld [vmem:[#allocation2 + $0x10] sm:$0xff] }
  0xfb   : > { %534 = vmatprep.subr.mxu0 %v488_v35  ;;  %v607_v35 = vld [vmem:[#allocation10 + $0x1] ss:$8 sm:$0x3] }
  0xfc   : > { %535 = vmatpush1.msra.mxu0 %v487_v36 }
  0xfe   : > { %v486_v37 = vld [vmem:[#allocation2 + $0x8] sm:$0xff]  ;;  %v485_v38 = vld [vmem:[#allocation2] sm:$0xff] }
  0xff   : > { %536 = vmatprep.subr.mxu0 %v486_v37 }
 0x100   : > { %537 = vmatpush1.msra.mxu0 %v485_v38 }
 0x101   : > { %1002 = vmatmul.mubr.msk.f32.vlgmr.msra.gmra.mxu0 %vm495_vm10, %v484_v39 }
 0x1c1   : > { %v572_v42 = vpop.f32.mrf.mxu0 }
 0x1c2   : > { %v1569_v43 = vmax.f32 %v572_v42, 0.0  ;;  %v612_v42 = vrot.slane %v607_v35, %v1507_v7 }
 0x1c3   : > { %v574_v44 = vpop.f32.mrf.mxu0 }
 0x1c4   : > { %v1571_v45 = vmax.f32 %v574_v44, 0.0  ;;  %735 = vrot.lane.b32.xlu0 %v1569_v43, %s1290_s21  ;;  %v616_v44 = vrot.slane %v607_v35, %v1509_v8 }
 0x1c6   : > { %737 = vrot.lane.b32.xlu1 %v1571_v45, %s1290_s21  ;;  %s1209_s21 = scalar_lea.vmem %s887_s28, 128 }
 0x1c7   : > { %p1210_p12 = scmp.ne.s32.totalorder %s887_s28, %s1209_s21 }
 0x1c8   : > { %713 = vrot.lane.b32.xlu0 %v1569_v43, %s1291_s23 }
 0x1c9   : > { %p1211_p7 = pnand %p1210_p12, %p1715_p5 }
 0x1ca   : > { %715 = vrot.lane.b32.xlu1 %v1571_v45, %s1291_s23  ;;  %s1299_s23 = smov [#allocation12]  }
 0x1cb   : > { %p1212_p10 = pneg %p1211_p7  ;;  %s1213_s19 = sshll.u32 %s1299_s23, 4  ;;  %s1214_s19 = int_to_ptr.vmem [resolvable:$false] %s1213_s19 }
 0x1cc   : > { %691 = vrot.lane.b32.xlu0 %v1569_v43, %s1293_s10  ;;  %s1215_s13 = scalar_lea.vmem %s1214_s19, 256  ;;  %p1216_p13 = scmp.lt.s32.totalorder %s887_s28, %s1214_s19 }
 0x1cd   : > { %p1217_p0 = scmp.lt.s32.totalorder %s1215_s13, %s1209_s21 }
 0x1ce   : > { %693 = vrot.lane.b32.xlu1 %v1571_v45, %s1293_s10 }
 0x1cf   : > { %p1218_p1 = por %p1217_p0, %p1216_p13 }
 0x1d0   : > { %669 = vrot.lane.b32.xlu0 %v1569_v43, %s1292_s8 }
 0x1d1   : > { %p1219_p3 = pnand %p1218_p1, %p1212_p10 }
 0x1d2   : > { %671 = vrot.lane.b32.xlu1 %v1571_v45, %s1292_s8 }
 0x1d4   : > { %645 = vrot.lane.b32.xlu0 %v1569_v43, %s1294_s11 }
 0x1d6   : > { %647 = vrot.lane.b32.xlu1 %v1571_v45, %s1294_s11 }
 0x1d8   : > { %623 = vrot.lane.b32.xlu0 %v1569_v43, %s1296_s25 }
 0x1da   : > { %625 = vrot.lane.b32.xlu1 %v1571_v45, %s1296_s25 }
 0x1dc   : > { %601 = vrot.lane.b32.xlu0 %v1569_v43, %s1295_s12 }
 0x1de   : > { %603 = vrot.lane.b32.xlu1 %v1571_v45, %s1295_s12 }
 0x1e0   : > { %579 = vrot.lane.b32.xlu0 %v1569_v43, %s1298_s26 }
 0x1e2   : > { %581 = vrot.lane.b32.xlu1 %v1571_v45, %s1298_s26 }
 0x236   : > { %v736_v47 = vpop.permute.xlu0 %735 }
 0x238   : > { %v738_v51 = vpop.permute.xlu1 %737 }
 0x239   : > { %v739_v52 = vsel %vm457_vm1, %v736_v47, %v738_v51  ;;  %v740_v53 = vsel %vm457_vm1, %v738_v51, %v736_v47 }
 0x23a   : > { %v753_v54 = vmul.f32 %v746_v48, %v739_v52  ;;  %v754_v55 = vmul.f32 %v750_v49, %v740_v53  ;;  %v714_v56 = vpop.permute.xlu0 %713 }
 0x23c   : > { %v716_v60 = vpop.permute.xlu1 %715  ;;  %806 = vmatprep.subr.mxu1 %v754_v55 }
 0x23d   : > { %v717_v61 = vsel %vm427_vm3, %v714_v56, %v716_v60  ;;  %v718_v62 = vsel %vm427_vm3, %v716_v60, %v714_v56  ;;  %807 = vmatpush1.msra.mxu1 %v753_v54 }
 0x23e   : > { %v731_v63 = vmul.f32 %v724_v57, %v717_v61  ;;  %v732_v0 = vmul.f32 %v728_v58, %v718_v62  ;;  %v692_v1 = vpop.permute.xlu0 %691  ;;  %v760_v58 = vld [vmem:[#allocation9] sm:$0xf] }
 0x240   : > { %v694_v9 = vpop.permute.xlu1 %693  ;;  %808 = vmatprep.subr.mxu1 %v732_v0 }
 0x241   : > { %v695_v10 = vsel %vm403_vm4, %v692_v1, %v694_v9  ;;  %v696_v11 = vsel %vm403_vm4, %v694_v9, %v692_v1  ;;  %809 = vmatpush1.msra.mxu1 %v731_v63 }
 0x242   : > { %v709_v12 = vmul.f32 %v702_v3, %v695_v10  ;;  %v710_v13 = vmul.f32 %v706_v4, %v696_v11  ;;  %v670_v14 = vpop.permute.xlu0 %669 }
 0x244   : > { %v672_v18 = vpop.permute.xlu1 %671  ;;  %810 = vmatprep.subr.mxu1 %v710_v13 }
 0x245   : > { %v673_v19 = vsel %vm373_vm2, %v670_v14, %v672_v18  ;;  %v674_v20 = vsel %vm373_vm2, %v672_v18, %v670_v14  ;;  %811 = vmatpush1.msra.mxu1 %v709_v12 }
 0x246   : > { %v687_v21 = vmul.f32 %v680_v15, %v673_v19  ;;  %v688_v22 = vmul.f32 %v684_v16, %v674_v20  ;;  %v646_v23 = vpop.permute.xlu0 %645 }
 0x248   : > { %v648_v27 = vpop.permute.xlu1 %647  ;;  %812 = vmatprep.subr.mxu1 %v688_v22 }
 0x249   : > { %v649_v28 = vsel %vm341_vm6, %v646_v23, %v648_v27  ;;  %v650_v29 = vsel %vm341_vm6, %v648_v27, %v646_v23  ;;  %813 = vmatpush1.msra.mxu1 %v687_v21 }
 0x24a   : > { %v663_v30 = vmul.f32 %v656_v24, %v650_v29  ;;  %v664_v31 = vmul.f32 %v660_v25, %v649_v28  ;;  %v624_v32 = vpop.permute.xlu0 %623  ;;  %814 = vmatprep.subr.mxu1 %v1571_v45  ;;  %v585_v45 = vld [vmem:[#allocation10] ss:$8 sm:$0x3] }
 0x24b   : > { %815 = vmatpush1.msra.mxu1 %v1569_v43  ;;  %v590_v50 = vrot.slane %v585_v45, %v1507_v7  ;;  %v594_v51 = vrot.slane %v585_v45, %v1509_v8 }
 0x24c   : > { %v626_v36 = vpop.permute.xlu1 %625  ;;  %816 = vmatprep.subr.mxu1 %v664_v31 }
 0x24d   : > { %v627_v37 = vsel %vm317_vm8, %v624_v32, %v626_v36  ;;  %v628_v38 = vsel %vm317_vm8, %v626_v36, %v624_v32  ;;  %817 = vmatpush1.msra.mxu1 %v663_v30 }
 0x24e   : > { %v641_v39 = vmul.f32 %v634_v33, %v628_v38  ;;  %v642_v40 = vmul.f32 %v638_v34, %v627_v37  ;;  %v602_v41 = vpop.permute.xlu0 %601 }
 0x250   : > { %v604_v46 = vpop.permute.xlu1 %603  ;;  %818 = vmatprep.subr.mxu1 %v642_v40 }
 0x251   : > { %v605_v43 = vsel %vm287_vm7, %v602_v41, %v604_v46  ;;  %v606_v47 = vsel %vm287_vm7, %v604_v46, %v602_v41  ;;  %819 = vmatpush1.msra.mxu1 %v641_v39 }
 0x252   : > { %v619_v48 = vmul.f32 %v612_v42, %v606_v47  ;;  %v620_v49 = vmul.f32 %v616_v44, %v605_v43  ;;  %v580_v52 = vpop.permute.xlu0 %579 }
 0x254   : > { %v582_v53 = vpop.permute.xlu1 %581  ;;  %820 = vmatprep.subr.mxu1 %v620_v49 }
 0x255   : > { %v583_v54 = vsel %vm264_vm9, %v580_v52, %v582_v53  ;;  %v584_v55 = vsel %vm264_vm9, %v582_v53, %v580_v52  ;;  %821 = vmatpush1.msra.mxu1 %v619_v48 }
 0x256   : > { %v597_v56 = vmul.f32 %v590_v50, %v584_v55  ;;  %v598_v57 = vmul.f32 %v594_v51, %v583_v54 }
 0x258   : > { %822 = vmatprep.subr.mxu1 %v598_v57 }
 0x259   : > { %823 = vmatpush1.msra.mxu1 %v597_v56 }
 0x25a   : > { %1005 = vmatmul.mubr.msk.f32.vlgmr.msra.gmra.mxu1 %vm781_vm12, %v760_v58 }
 0x31a   : > { %v858_v7 = vpop.f32.mrf.mxu1 }
 0x31b   : > { %v863_v59 = vmul.f32 0.5, %v858_v7 }
 0x31c   : > { %v860_v8 = vpop.f32.mrf.mxu1 }
 0x31d   : > { %v864_v60 = vmul.f32 0.5, %v860_v8 }
 0x31f   : > { %v867_v6 = vcombine.low %v863_v59, %v864_v60 }
 0x321   : > { %v869_v61 = vadd.f32 %v867_v6, %v1476_v2 }
 0x323   : > { %870 = vst [vmem:[%s253_s30] sm:$0xff] %v869_v61 }
 0x324   : > { %1222 = shalt.err (!%p1219_p3)
}
 0x325   : > { %s1223_s8 = scalar_lea.hbm %s884_s14, 128  ;;  %s1227_s11 = scalar_lea.hbm %s1697_s4, 256 }
 0x326   : > { %p1224_p4 = scmp.ne.s32.totalorder %s884_s14, %s1223_s8  ;;  %p1228_p11 = scmp.lt.s32.totalorder %s884_s14, %s1697_s4 }
 0x327   : > { %p1229_p6 = scmp.lt.s32.totalorder %s1227_s11, %s1223_s8 }
 0x328   : > { %p1225_p2 = pnand %p1224_p4, %p1715_p5 }
 0x329   : > { %p1230_p8 = por %p1229_p6, %p1228_p11 }
 0x32a   : > { %p1226_p9 = pneg %p1225_p2 }
 0x32c   : > { %p1231_p12 = pnand %p1230_p8, %p1226_p9 }
 0x32e   : > { %1234 = shalt.err (!%p1231_p12)
}
 0x32f   : > { %1027 = dma.vmem_to_hbm [thread:$0]  (%p1715_p5), %s887_s28, 128, %s884_s14, %s872_s20  }
 0x330 PF: > { %s898_s26 = sand.u32 1, %s1269_s15   ;;  %p1716_p7 = scmp.ne.s32.totalorder %s1703_s22, 0 }
 0x331   : > { %p1717_p10 = scmp.ge.s32.totalorder %s1281_s18, 2  ;;  %s899_s5 = scalar_lea.sflag [#allocation6], %s898_s26 }
 0x333   : > { %p1044_p13 = pnand %p1717_p10, %p1716_p7 }
 0x335   : > { %p1045_p0 = pneg %p1044_p13 }
 0x337   : > { %1264 = dma.done.wait (%p1045_p0), %s899_s5, 128  }
 0x338   : > { %1266 = vsyncadd (%p1045_p0), %s899_s5, 4294967168  ;;  %p19_p1 = scmp.ge.s32.totalorder %s1412_s24, 4   ;;  %s1718_s15 = smov %s1273_s16 }
 0x339   : > { %s1719_s16 = smov %s1277_s17  ;;  %s1720_s17 = smov %s1422_s27 }
 0x33a   : > { %s1721_s18 = smov %s1412_s24  ;;  %21 = sbr.rel (!%p19_p1) target bundleno = 7 (0x7), region = 102 }
 0x33f   :  { %904 = vsyncpa [#allocation5], 1 }
 0x340   :  { %906 = vsyncpa [#allocation5 + $0x1], 1 }
 0x341   :  { %907 = vsyncpa [#allocation8], 1 }
 0x342   :  { %908 = vsyncpa [#allocation11], 1 }
 0x343   :  { %909 = vsyncpa [#allocation6], 1 }
 0x344   :  { %911 = vsyncpa [#allocation6 + $0x1], 1 }

</bundles_post_ra>
